<compile_context>
chip_gen: v5e
topology: v5e:2x2
jax: 0.10.0
libtpu: 0.0.40
codegen_flags: <defaults>
</compile_context>

<pallas_src>
import jax
import jax.numpy as jnp
from jax.experimental import pallas as pl
from jax.experimental.pallas import tpu as pltpu

_LANE = 128        # pad action dim to a full vreg lane width for dense stores
_NEG_INF = -1e30   # bias for padded action columns -> exp underflows to exactly 0


def _round_up(n, m):
    return (n + m - 1) // m * m


def policy_net_kernel(x_ref, w1_ref, b1_ref, w2_ref, b2_ref, out_ref):
    # fc1: bf16 operands on the MXU, f32 accumulation; bias + ReLU in f32.
    h = jnp.dot(x_ref[...], w1_ref[...], preferred_element_type=jnp.float32)
    h = jnp.maximum(h + b1_ref[...], 0.0)                         # (TB, H) f32

    # fc2: cast activations back to bf16 for the MXU, accumulate in f32.
    logits = jnp.dot(h.astype(jnp.bfloat16), w2_ref[...],
                     preferred_element_type=jnp.float32)          # (TB, 128)
    logits = logits + b2_ref[...]      # padded action lanes receive -1e30 here

    # Numerically stable softmax over the (lane-dense, padded) action axis.
    m = jnp.max(logits, axis=-1, keepdims=True)
    e = jnp.exp(logits - m)                                       # padded lanes -> 0
    out_ref[...] = (e / jnp.sum(e, axis=-1, keepdims=True)).astype(out_ref.dtype)


def policy_net_forward(x, w1, b1, w2, b2, *, block_batch=4096):
    """PolicyNet forward: softmax(relu(x @ w1 + b1) @ w2 + b2, axis=1).

    x : (B, state_dim) f32
    w1: (state_dim, hidden_dim)   (pre-transposed torch weight)
    b1: (1, hidden_dim)
    w2: (hidden_dim, action_dim)
    b2: (1, action_dim)
    Returns (B, action_dim) f32 probabilities.
    """
    B, S = x.shape
    H = w1.shape[1]
    A = w2.shape[1]

    # Pad the contraction (state) dim to a multiple of 8 for aligned LHS loads.
    Sp = _round_up(S, 8)
    if Sp != S:
        x = jnp.pad(x, ((0, 0), (0, Sp - S)))
        w1 = jnp.pad(w1, ((0, Sp - S), (0, 0)))

    # Pad the action dim to a full 128-lane vreg: zero weight columns, -1e30
    # bias on the padded logits so they get exactly zero softmax mass.
    AP = _round_up(A, _LANE)
    if AP != A:
        w2 = jnp.pad(w2, ((0, 0), (0, AP - A)))
        b2 = jnp.pad(b2, ((0, 0), (0, AP - A)), constant_values=_NEG_INF)

    # Batch tile: as large as block_batch, multiple of 8, and split so the grid
    # has >=2 steps whenever the batch allows (feeds both v7x TensorCores).
    Bp8 = _round_up(B, 8)
    TB = min(block_batch, max(8, _round_up(-(-Bp8 // 2), 8)))
    Bp = _round_up(B, TB)
    if Bp != B:
        x = jnp.pad(x, ((0, Bp - B), (0, 0)))   # padded rows are sliced off below
    grid = (Bp // TB,)

    # bf16 matmul operands (halves x DMA bytes and MXU cycles); biases stay f32.
    x = x.astype(jnp.bfloat16)
    w1 = w1.astype(jnp.bfloat16)
    w2 = w2.astype(jnp.bfloat16)
    b1 = b1.astype(jnp.float32)
    b2 = b2.astype(jnp.float32)

    cost = pl.CostEstimate(
        flops=2 * Bp * (Sp * H + H * AP),
        transcendentals=Bp * AP,
        bytes_accessed=2 * (Bp * Sp + Sp * H + H * AP) + 4 * (H + AP + Bp * AP),
    )

    def const_spec(shape, pipeline_mode):
        idx = lambda i: (0, 0)   # constant index_map -> VMEM-resident, DMA'd once
        if pipeline_mode is None:
            return pl.BlockSpec(shape, idx)
        return pl.BlockSpec(shape, idx, pipeline_mode=pipeline_mode)

    def run(weight_mode):
        return pl.pallas_call(
            policy_net_kernel,
            out_shape=jax.ShapeDtypeStruct((Bp, AP), jnp.float32),
            grid=grid,
            in_specs=[
                pl.BlockSpec((TB, Sp), lambda i: (i, 0)),        # x: tiled over batch
                const_spec((Sp, H), weight_mode),                # w1
                const_spec((1, H), weight_mode),                 # b1
                const_spec((H, AP), weight_mode),                # w2
                const_spec((1, AP), weight_mode),                # b2
            ],
            out_specs=pl.BlockSpec((TB, AP), lambda i: (i, 0)),  # lane-dense store
            compiler_params=pltpu.CompilerParams(
                dimension_semantics=("parallel",),               # megacore on v7x
                vmem_limit_bytes=32 * 1024 * 1024,               # > v5e 16MiB scoped default
            ),
            cost_estimate=cost,
        )(x, w1, b1, w2, b2)

    try:
        # Grid-constant weights only need a single VMEM buffer (small VMEM saving).
        out = run(pl.Buffered(1))
    except Exception:  # fallback: jax build without single-buffered pipeline_mode
        out = run(None)

    return out[:B, :A]


def init_params(key, state_dim, hidden_dim, action_dim):
    """Deterministic init mimicking torch.nn.Linear default (U(+-1/sqrt(fan_in)))."""
    k1, k2, k3, k4 = jax.random.split(key, 4)
    bound1 = 1.0 / jnp.sqrt(jnp.float32(state_dim))
    bound2 = 1.0 / jnp.sqrt(jnp.float32(hidden_dim))
    # Stored pre-transposed: (in_features, out_features)
    w1 = jax.random.uniform(k1, (state_dim, hidden_dim), jnp.float32, -bound1, bound1)
    b1 = jax.random.uniform(k2, (1, hidden_dim), jnp.float32, -bound1, bound1)
    w2 = jax.random.uniform(k3, (hidden_dim, action_dim), jnp.float32, -bound2, bound2)
    b2 = jax.random.uniform(k4, (1, action_dim), jnp.float32, -bound2, bound2)
    return w1, b1, w2, b2


if __name__ == "__main__":
    # CartPole-v0: state_dim=4, action_dim=2; hidden_dim=128 per the module.
    state_dim, hidden_dim, action_dim = 4, 128, 2
    batch = 8

    key = jax.random.PRNGKey(0)
    kx, kp = jax.random.split(key)
    x = jax.random.normal(kx, (batch, state_dim), dtype=jnp.float32)
    w1, b1, w2, b2 = init_params(kp, state_dim, hidden_dim, action_dim)

    out = policy_net_forward(x, w1, b1, w2, b2)
    out = jax.block_until_ready(out)
    assert out.shape == (batch, action_dim)

    # Reference 1: mirrors the kernel's bf16-matmul / f32-accumulate strategy.
    h_bf = jnp.dot(x.astype(jnp.bfloat16), w1.astype(jnp.bfloat16),
                   preferred_element_type=jnp.float32)
    h_bf = jnp.maximum(h_bf + b1, 0.0)
    logits_bf = jnp.dot(h_bf.astype(jnp.bfloat16), w2.astype(jnp.bfloat16),
                        preferred_element_type=jnp.float32) + b2
    ref_bf = jax.nn.softmax(logits_bf, axis=1)
    assert jnp.allclose(out, ref_bf, atol=1e-4, rtol=1e-4)

    # Reference 2: pure-f32 torch-equivalent forward (bf16 rounding tolerance).
    ref_f32 = jax.nn.softmax(jnp.maximum(x @ w1 + b1, 0.0) @ w2 + b2, axis=1)
    assert jnp.allclose(out, ref_f32, atol=2e-2, rtol=2e-2)

    # Exact softmax division -> real-action rows sum to 1 tightly.
    assert jnp.allclose(jnp.sum(out, axis=1), 1.0, atol=1e-5)

    print("KERNEL_OK")
</pallas_src>

<mosaic_0001>
module attributes {stable_mosaic.version = 11 : i64} {
  func.func @policy_net_kernel(%arg0: i32, %arg1: memref<8x8xbf16, #tpu.memory_space<vmem>>, %arg2: memref<8x128xbf16, #tpu.memory_space<vmem>>, %arg3: memref<1x128xf32, #tpu.memory_space<vmem>>, %arg4: memref<128x128xbf16, #tpu.memory_space<vmem>>, %arg5: memref<1x128xf32, #tpu.memory_space<vmem>>, %arg6: memref<8x128xf32, #tpu.memory_space<vmem>>) attributes {dimension_semantics = [#tpu.dimension_semantics<parallel>], iteration_bounds = array<i64: 1>, scalar_prefetch = 0 : i64, scratch_operands = 0 : i64, tpu.core_type = #tpu.core_type<tc>, window_params = [{transform_indices = @transform_0, window_bounds = array<i64: 8, 8>}, {pipeline_mode = #tpu.pipeline_mode<synchronous>, transform_indices = @transform_1, window_bounds = array<i64: 8, 128>}, {pipeline_mode = #tpu.pipeline_mode<synchronous>, transform_indices = @transform_2, window_bounds = array<i64: 1, 128>}, {pipeline_mode = #tpu.pipeline_mode<synchronous>, transform_indices = @transform_3, window_bounds = array<i64: 128, 128>}, {pipeline_mode = #tpu.pipeline_mode<synchronous>, transform_indices = @transform_4, window_bounds = array<i64: 1, 128>}, {transform_indices = @transform_5, window_bounds = array<i64: 8, 128>}]} {
    %c0 = arith.constant 0 : index
    %c0_0 = arith.constant 0 : index
    %0 = vector.load %arg1[%c0, %c0_0] : memref<8x8xbf16, #tpu.memory_space<vmem>>, vector<8x8xbf16>
    %c0_1 = arith.constant 0 : index
    %c0_2 = arith.constant 0 : index
    %1 = vector.load %arg2[%c0_1, %c0_2] : memref<8x128xbf16, #tpu.memory_space<vmem>>, vector<8x128xbf16>
    %cst = arith.constant dense<0.000000e+00> : vector<8x128xf32>
    %2 = tpu.matmul %0, %1, %cst {dimension_numbers = #tpu.dot_dimension_numbers<[1], [0], [0], [1], [0, 0, 1, 1], [], []>} : vector<8x8xbf16>, vector<8x128xbf16>, vector<8x128xf32> -> vector<8x128xf32>
    %c0_3 = arith.constant 0 : index
    %c0_4 = arith.constant 0 : index
    %3 = vector.load %arg3[%c0_3, %c0_4] : memref<1x128xf32, #tpu.memory_space<vmem>>, vector<1x128xf32>
    %4 = vector.broadcast %3 : vector<1x128xf32> to vector<8x128xf32>
    %5 = arith.addf %2, %4 : vector<8x128xf32>
    %cst_5 = arith.constant 0.000000e+00 : f32
    %6 = vector.broadcast %cst_5 : f32 to vector<8x128xf32>
    %7 = arith.maximumf %5, %6 : vector<8x128xf32>
    %8 = arith.truncf %7 : vector<8x128xf32> to vector<8x128xbf16>
    %c0_6 = arith.constant 0 : index
    %c0_7 = arith.constant 0 : index
    %9 = vector.load %arg4[%c0_6, %c0_7] : memref<128x128xbf16, #tpu.memory_space<vmem>>, vector<128x128xbf16>
    %cst_8 = arith.constant dense<0.000000e+00> : vector<8x128xf32>
    %10 = tpu.matmul %8, %9, %cst_8 {dimension_numbers = #tpu.dot_dimension_numbers<[1], [0], [0], [1], [0, 0, 1, 1], [], []>} : vector<8x128xbf16>, vector<128x128xbf16>, vector<8x128xf32> -> vector<8x128xf32>
    %c0_9 = arith.constant 0 : index
    %c0_10 = arith.constant 0 : index
    %11 = vector.load %arg5[%c0_9, %c0_10] : memref<1x128xf32, #tpu.memory_space<vmem>>, vector<1x128xf32>
    %12 = vector.broadcast %11 : vector<1x128xf32> to vector<8x128xf32>
    %13 = arith.addf %10, %12 : vector<8x128xf32>
    %cst_11 = arith.constant dense<0xFF800000> : vector<8xf32>
    %14 = vector.multi_reduction <maximumf>, %13, %cst_11 [1] : vector<8x128xf32> to vector<8xf32>
    %15 = vector.shape_cast %14 : vector<8xf32> to vector<8x1xf32>
    %16 = vector.broadcast %15 : vector<8x1xf32> to vector<8x128xf32>
    %17 = arith.subf %13, %16 : vector<8x128xf32>
    %18 = math.exp %17 : vector<8x128xf32>
    %cst_12 = arith.constant dense<0.000000e+00> : vector<8xf32>
    %19 = vector.multi_reduction <add>, %18, %cst_12 [1] : vector<8x128xf32> to vector<8xf32>
    %20 = vector.shape_cast %19 : vector<8xf32> to vector<8x1xf32>
    %21 = vector.broadcast %20 : vector<8x1xf32> to vector<8x128xf32>
    %22 = arith.divf %18, %21 : vector<8x128xf32>
    %c0_13 = arith.constant 0 : index
    %c0_14 = arith.constant 0 : index
    %23 = vector.load %arg6[%c0_13, %c0_14] : memref<8x128xf32, #tpu.memory_space<vmem>>, vector<8x128xf32>
    tpu.vector_store %arg6[%c0_13, %c0_14], %22 {strides = array<i32>} : memref<8x128xf32, #tpu.memory_space<vmem>>, vector<8x128xf32>,
    return
  }
  func.func @transform_0(%arg0: i32) -> (i32, i32) {
    %c0_i32 = arith.constant 0 : i32
    %c0_i32_0 = arith.constant 0 : i32
    return %arg0, %c0_i32 : i32, i32
  }
  func.func @transform_1(%arg0: i32) -> (i32, i32) {
    %c0_i32 = arith.constant 0 : i32
    %c0_i32_0 = arith.constant 0 : i32
    %c0_i32_1 = arith.constant 0 : i32
    return %c0_i32, %c0_i32_0 : i32, i32
  }
  func.func @transform_2(%arg0: i32) -> (i32, i32) {
    %c0_i32 = arith.constant 0 : i32
    %c0_i32_0 = arith.constant 0 : i32
    %c0_i32_1 = arith.constant 0 : i32
    return %c0_i32, %c0_i32_0 : i32, i32
  }
  func.func @transform_3(%arg0: i32) -> (i32, i32) {
    %c0_i32 = arith.constant 0 : i32
    %c0_i32_0 = arith.constant 0 : i32
    %c0_i32_1 = arith.constant 0 : i32
    return %c0_i32, %c0_i32_0 : i32, i32
  }
  func.func @transform_4(%arg0: i32) -> (i32, i32) {
    %c0_i32 = arith.constant 0 : i32
    %c0_i32_0 = arith.constant 0 : i32
    %c0_i32_1 = arith.constant 0 : i32
    return %c0_i32, %c0_i32_0 : i32, i32
  }
  func.func @transform_5(%arg0: i32) -> (i32, i32) {
    %c0_i32 = arith.constant 0 : i32
    %c0_i32_0 = arith.constant 0 : i32
    return %arg0, %c0_i32 : i32, i32
  }
}

module attributes {stable_mosaic.version = 11 : i64} {
  func.func @policy_net_kernel(%arg0: i32, %arg1: memref<8x8xbf16, #tpu.memory_space<vmem>>, %arg2: memref<8x128xbf16, #tpu.memory_space<vmem>>, %arg3: memref<1x128xf32, #tpu.memory_space<vmem>>, %arg4: memref<128x128xbf16, #tpu.memory_space<vmem>>, %arg5: memref<1x128xf32, #tpu.memory_space<vmem>>, %arg6: memref<8x128xf32, #tpu.memory_space<vmem>>) attributes {dimension_semantics = [#tpu.dimension_semantics<parallel>], iteration_bounds = array<i64: 1>, scalar_prefetch = 0 : i64, scratch_operands = 0 : i64, tpu.core_type = #tpu.core_type<tc>, window_params = [{transform_indices = @transform_0, window_bounds = array<i64: 8, 8>}, {pipeline_mode = #tpu.pipeline_mode<synchronous>, transform_indices = @transform_1, window_bounds = array<i64: 8, 128>}, {pipeline_mode = #tpu.pipeline_mode<synchronous>, transform_indices = @transform_2, window_bounds = array<i64: 1, 128>}, {pipeline_mode = #tpu.pipeline_mode<synchronous>, transform_indices = @transform_3, window_bounds = array<i64: 128, 128>}, {pipeline_mode = #tpu.pipeline_mode<synchronous>, transform_indices = @transform_4, window_bounds = array<i64: 1, 128>}, {transform_indices = @transform_5, window_bounds = array<i64: 8, 128>}]} {
    %c0 = arith.constant 0 : index
    %c0_0 = arith.constant 0 : index
    %0 = vector.load %arg1[%c0, %c0_0] : memref<8x8xbf16, #tpu.memory_space<vmem>>, vector<8x8xbf16>
    %c0_1 = arith.constant 0 : index
    %c0_2 = arith.constant 0 : index
    %1 = vector.load %arg2[%c0_1, %c0_2] : memref<8x128xbf16, #tpu.memory_space<vmem>>, vector<8x128xbf16>
    %cst = arith.constant dense<0.000000e+00> : vector<8x128xf32>
    %2 = tpu.matmul %0, %1, %cst {dimension_numbers = #tpu.dot_dimension_numbers<[1], [0], [0], [1], [0, 0, 1, 1], [], []>} : vector<8x8xbf16>, vector<8x128xbf16>, vector<8x128xf32> -> vector<8x128xf32>
    %c0_3 = arith.constant 0 : index
    %c0_4 = arith.constant 0 : index
    %3 = vector.load %arg3[%c0_3, %c0_4] : memref<1x128xf32, #tpu.memory_space<vmem>>, vector<1x128xf32>
    %4 = vector.broadcast %3 : vector<1x128xf32> to vector<8x128xf32>
    %5 = arith.addf %2, %4 : vector<8x128xf32>
    %cst_5 = arith.constant 0.000000e+00 : f32
    %6 = vector.broadcast %cst_5 : f32 to vector<8x128xf32>
    %7 = arith.maximumf %5, %6 : vector<8x128xf32>
    %8 = arith.truncf %7 : vector<8x128xf32> to vector<8x128xbf16>
    %c0_6 = arith.constant 0 : index
    %c0_7 = arith.constant 0 : index
    %9 = vector.load %arg4[%c0_6, %c0_7] : memref<128x128xbf16, #tpu.memory_space<vmem>>, vector<128x128xbf16>
    %cst_8 = arith.constant dense<0.000000e+00> : vector<8x128xf32>
    %10 = tpu.matmul %8, %9, %cst_8 {dimension_numbers = #tpu.dot_dimension_numbers<[1], [0], [0], [1], [0, 0, 1, 1], [], []>} : vector<8x128xbf16>, vector<128x128xbf16>, vector<8x128xf32> -> vector<8x128xf32>
    %c0_9 = arith.constant 0 : index
    %c0_10 = arith.constant 0 : index
    %11 = vector.load %arg5[%c0_9, %c0_10] : memref<1x128xf32, #tpu.memory_space<vmem>>, vector<1x128xf32>
    %12 = vector.broadcast %11 : vector<1x128xf32> to vector<8x128xf32>
    %13 = arith.addf %10, %12 : vector<8x128xf32>
    %cst_11 = arith.constant dense<0xFF800000> : vector<8xf32>
    %14 = vector.multi_reduction <maximumf>, %13, %cst_11 [1] : vector<8x128xf32> to vector<8xf32>
    %15 = vector.shape_cast %14 : vector<8xf32> to vector<8x1xf32>
    %16 = vector.broadcast %15 : vector<8x1xf32> to vector<8x128xf32>
    %17 = arith.subf %13, %16 : vector<8x128xf32>
    %18 = math.exp %17 : vector<8x128xf32>
    %cst_12 = arith.constant dense<0.000000e+00> : vector<8xf32>
    %19 = vector.multi_reduction <add>, %18, %cst_12 [1] : vector<8x128xf32> to vector<8xf32>
    %20 = vector.shape_cast %19 : vector<8xf32> to vector<8x1xf32>
    %21 = vector.broadcast %20 : vector<8x1xf32> to vector<8x128xf32>
    %22 = arith.divf %18, %21 : vector<8x128xf32>
    %c0_13 = arith.constant 0 : index
    %c0_14 = arith.constant 0 : index
    %23 = vector.load %arg6[%c0_13, %c0_14] : memref<8x128xf32, #tpu.memory_space<vmem>>, vector<8x128xf32>
    tpu.vector_store %arg6[%c0_13, %c0_14], %22 {strides = array<i32>} : memref<8x128xf32, #tpu.memory_space<vmem>>, vector<8x128xf32>,
    return
  }
  func.func @transform_0(%arg0: i32) -> (i32, i32) {
    %c0_i32 = arith.constant 0 : i32
    %c0_i32_0 = arith.constant 0 : i32
    return %arg0, %c0_i32 : i32, i32
  }
  func.func @transform_1(%arg0: i32) -> (i32, i32) {
    %c0_i32 = arith.constant 0 : i32
    %c0_i32_0 = arith.constant 0 : i32
    %c0_i32_1 = arith.constant 0 : i32
    return %c0_i32, %c0_i32_0 : i32, i32
  }
  func.func @transform_2(%arg0: i32) -> (i32, i32) {
    %c0_i32 = arith.constant 0 : i32
    %c0_i32_0 = arith.constant 0 : i32
    %c0_i32_1 = arith.constant 0 : i32
    return %c0_i32, %c0_i32_0 : i32, i32
  }
  func.func @transform_3(%arg0: i32) -> (i32, i32) {
    %c0_i32 = arith.constant 0 : i32
    %c0_i32_0 = arith.constant 0 : i32
    %c0_i32_1 = arith.constant 0 : i32
    return %c0_i32, %c0_i32_0 : i32, i32
  }
  func.func @transform_4(%arg0: i32) -> (i32, i32) {
    %c0_i32 = arith.constant 0 : i32
    %c0_i32_0 = arith.constant 0 : i32
    %c0_i32_1 = arith.constant 0 : i32
    return %c0_i32, %c0_i32_0 : i32, i32
  }
  func.func @transform_5(%arg0: i32) -> (i32, i32) {
    %c0_i32 = arith.constant 0 : i32
    %c0_i32_0 = arith.constant 0 : i32
    return %arg0, %c0_i32 : i32, i32
  }
}

</mosaic_0001>

<bundles_post_ra>
// kernel: tpu_custom_call.1
= control target key start
LH: loop header
LB: loop body
LE: loop exit
PB: predicated region body
PF: predicated region fallthrough
CT: control target
= control target key end

     0   :  { %10 = vsyncpa [#allocation3], 0  ;;  %s425_s0 = inlined_call_operand.hbm [shape: bf16[8,8], index: 0, kind: input, shape index: {}]   ;;  %s426_s1 = inlined_call_operand.hbm [shape: bf16[8,128], index: 1, kind: input, shape index: {}]   ;;  %s427_s2 = inlined_call_operand.vmem [shape: f32[1,128], index: 2, kind: input, shape index: {}]   ;;  %s428_s3 = inlined_call_operand.hbm [shape: bf16[128,128], index: 3, kind: input, shape index: {}]   ;;  %s429_s4 = inlined_call_operand.vmem [shape: f32[1,128], index: 4, kind: input, shape index: {}]   ;;  %s430_s5 = inlined_call_operand.hbm [shape: f32[8,128], index: 5, kind: output, shape index: {}]  }
   0x1   :  { %11 = vsyncpa [#allocation6], 0  ;;  %s29_s20 = sshll.u32 %s426_s1, 4  ;;  %s30_s20 = int_to_ptr.hbm [resolvable:$true] %s29_s20 }
   0x2   :  { %12 = vsyncpa [#allocation4], 0  ;;  %s371_s21 = smov [#allocation5]   ;;  %s18_s25 = sshll.u32 %s425_s0, 4  ;;  %s19_s25 = int_to_ptr.hbm [resolvable:$true] %s18_s25 }
   0x3   :  { %s31_s22 = sshll.u32 %s371_s21, 4  ;;  %s372_s26 = smov [#allocation2]   ;;  %s32_s22 = int_to_ptr.vmem [resolvable:$true] %s31_s22 }
   0x4   :  { %34 = dma.hbm_to_vmem [thread:$0]  %s30_s20, 64, %s32_s22, [#allocation6]  }
   0x5   :  { %s20_s27 = sshll.u32 %s372_s26, 4  ;;  %s41_s30 = sshll.u32 %s428_s3, 4  ;;  %s21_s27 = int_to_ptr.vmem [resolvable:$true] %s20_s27  ;;  %s42_s30 = int_to_ptr.hbm [resolvable:$true] %s41_s30 }
   0x6   :  { %23 = dma.hbm_to_vmem [thread:$0]  %s19_s25, 64, %s21_s27, [#allocation3]  }
   0x7   :  { %s373_s1 = smov [#allocation7]   ;;  %s374_s7 = smov 64  }
   0x8   :  { %s43_s6 = sshll.u32 %s373_s1, 4  ;;  %s375_s8 = smov 4   ;;  %s44_s6 = int_to_ptr.vmem [resolvable:$true] %s43_s6 }
   0x9   :  { %49 = dma.hbm_to_vmem [thread:$0]  %s42_s30, 1024, %s44_s6, [#allocation6], %s374_s7, %s374_s7, %s375_s8  }
   0xa   :  { %365 = dma.done.wait [#allocation3], 64  }
   0xb   :  { %366 = vsyncadd [#allocation3], 4294967232 }
   0xc   :  { %367 = dma.done.wait [#allocation6], 1088  }
   0xd   :  { %368 = vsyncadd [#allocation6], 4294966208  ;;  %vm75_vm0 = vcmask 1043456   ;;  %v66_v0 = vld [vmem:[#allocation5] sm:$0xf]  ;;  %vm71_vm1 = vcmask 64512  }
   0xe   :  { %v256_v1 = vld [vmem:[#allocation7 + $0x38] sm:$0xff]  ;;  %v77_v2 = vsel %vm75_vm0, %v66_v0, 0  ;;  %v255_v4 = vld [vmem:[#allocation7 + $0x30] sm:$0xff]  ;;  %v254_v5 = vld [vmem:[#allocation7 + $0x28] sm:$0xff]  ;;  %s205_s13 = sshll.u32 %s430_s5, 4  ;;  %s206_s13 = int_to_ptr.hbm [resolvable:$true] %s205_s13 }
   0xf   :  { %86 = vmatpush.bf16.msra.mxu0 %v77_v2  ;;  %v65_v3 = vld [vmem:[#allocation2] sm:$0xf]  ;;  %162 = vmatpush.bf16.msra.mxu1 %v256_v1  ;;  %v253_v6 = vld [vmem:[#allocation7 + $0x20] sm:$0xff]  ;;  %v251_v8 = vld [vmem:[#allocation7 + $0x10] sm:$0xff] }
  0x10   :  { %v252_v7 = vld [vmem:[#allocation7 + $0x18] sm:$0xff]  ;;  %v250_v9 = vld [vmem:[#allocation7 + $0x8] sm:$0xff]  ;;  %v249_v10 = vld [vmem:[#allocation7] sm:$0xff] }
  0x11   :  { %v263_v11 = vld [vmem:[%s427_s2] ss:$0 sm:$0xff]  ;;  %s376_s2 = smov [#allocation8]  }
  0x12   :  { %216 = vmatmul.msk.bf16.vlgmr.msra.gmra.mxu0 %vm71_vm1, %v65_v3  ;;  %v264_v17 = vld [vmem:[%s429_s4] ss:$0 sm:$0xff]  ;;  %s203_s4 = sshll.u32 %s376_s2, 4  ;;  %s204_s4 = int_to_ptr.vmem [resolvable:$true] %s203_s4 }
  0x13   :  { %163 = vmatpush.bf16.msra.mxu1 %v255_v4 }
  0x17   :  { %164 = vmatpush.bf16.msra.mxu1 %v254_v5 }
  0x1b   :  { %165 = vmatpush.bf16.msra.mxu1 %v253_v6 }
  0x1f   :  { %166 = vmatpush.bf16.msra.mxu1 %v252_v7 }
  0x23   :  { %167 = vmatpush.bf16.msra.mxu1 %v251_v8 }
  0x27   :  { %168 = vmatpush.bf16.msra.mxu1 %v250_v9 }
  0x2b   :  { %169 = vmatpush.bf16.msra.mxu1 %v249_v10 }
  0x8f   :  { %v88_v12 = vpop.f32.mrf.mxu0 }
  0x90   :  { %v89_v13 = vadd.f32 %v263_v11, %v88_v12 }
  0x92   :  { %v92_v14 = vmax.f32 %v89_v13, 0.0 }
  0x94   :  { %v93_v15 = vpack.c.bf16 %v92_v14, %v92_v14 }
  0x96   :  { %170 = vmatmul.bf16.vlgmr.msra.gmra.mxu1 %v93_v15 }
  0x97   :  { %v90_v16 = vpop.f32.mrf.mxu0 }
 0x113   :  { %v171_v18 = vpop.f32.mrf.mxu1 }
 0x114   :  { %v172_v19 = vadd.f32 %v264_v17, %v171_v18 }
 0x116   :  { %175 = vmax.xlane.f32.xlu0 %v172_v19 }
 0x11b   :  { %v173_v20 = vpop.f32.mrf.mxu1 }
 0x189   :  { %v176_v21 = vpop.xlane.xlu0 %175 }
 0x18a   :  { %v177_v22 = vsub.f32 %v172_v19, %v176_v21 }
 0x18c   :  { %v178_v23 = vmul.f32 1.442695, %v177_v22 }
 0x18e   :  { %265 = vpow2.f32 %v178_v23 }
 0x194   :  { %v266_v24 = vpop.eup %265 }
 0x195   :  { %180 = vadd.xlane.f32.xlu0 %v266_v24 }
 0x208   :  { %v181_v25 = vpop.xlane.xlu0 %180 }
 0x209   :  { %267 = vrcp.f32 %v181_v25  ;;  %v193_v29 = vand.u32 2147483648, %v181_v25  ;;  %v191_v31 = vand.u32 2147483647, %v181_v25  ;;  %vm187_vm3 = vweird.f32 %v181_v25 }
 0x20b   :  { %v194_v33 = vor.u32 1.1754944e-38, %v193_v29  ;;  %vm192_vm5 = vcmp.eq.f32.partialorder %v191_v31, 8.507059e+37 }
 0x20f   :  { %v268_v26 = vpop.eup %267 }
 0x210   :  { %v183_v27 = vmul.f32 %v268_v26, %v181_v25  ;;  %vm188_vm2 = vweird.f32 %v268_v26 }
 0x211   :  { %vm189_vm4 = vmor %vm187_vm3, %vm188_vm2 }
 0x212   :  { %v184_v28 = vsub.f32 1.0, %v183_v27 }
 0x214   :  { %v185_v30 = vmul.f32 %v268_v26, %v184_v28 }
 0x216   :  { %v186_v32 = vadd.f32 %v268_v26, %v185_v30 }
 0x218   :  { %v190_v34 = vsel %vm189_vm4, %v268_v26, %v186_v32 }
 0x219   :  { %v195_v35 = vsel %vm192_vm5, %v194_v33, %v190_v34 }
 0x21a   :  { %v196_v36 = vmul.f32 %v266_v24, %v195_v35 }
 0x21c   :  { %197 = vst [vmem:[#allocation8] sm:$0xff] %v196_v36 }
 0x21d   :  { %208 = dma.vmem_to_hbm [thread:$0]  %s204_s4, 128, %s206_s13, [#allocation4]  }
 0x21e   :  { %369 = dma.done.wait [#allocation4], 128  }
 0x21f   :  { %370 = vsyncadd [#allocation4], 4294967168 }
 0x220   :  { %213 = vsyncpa [#allocation3], 1 }
 0x221   :  { %214 = vsyncpa [#allocation6], 1 }
 0x222   :  { %215 = vsyncpa [#allocation4], 1 }

// kernel: tpu_custom_call.1
= control target key start
LH: loop header
LB: loop body
LE: loop exit
PB: predicated region body
PF: predicated region fallthrough
CT: control target
= control target key end

     0   :  { %10 = vsyncpa [#allocation3], 0  ;;  %s425_s0 = inlined_call_operand.hbm [shape: bf16[8,8], index: 0, kind: input, shape index: {}]   ;;  %s426_s1 = inlined_call_operand.hbm [shape: bf16[8,128], index: 1, kind: input, shape index: {}]   ;;  %s427_s2 = inlined_call_operand.vmem [shape: f32[1,128], index: 2, kind: input, shape index: {}]   ;;  %s428_s3 = inlined_call_operand.hbm [shape: bf16[128,128], index: 3, kind: input, shape index: {}]   ;;  %s429_s4 = inlined_call_operand.vmem [shape: f32[1,128], index: 4, kind: input, shape index: {}]   ;;  %s430_s5 = inlined_call_operand.hbm [shape: f32[8,128], index: 5, kind: output, shape index: {}]  }
   0x1   :  { %11 = vsyncpa [#allocation6], 0  ;;  %s29_s20 = sshll.u32 %s426_s1, 4  ;;  %s30_s20 = int_to_ptr.hbm [resolvable:$true] %s29_s20 }
   0x2   :  { %12 = vsyncpa [#allocation4], 0  ;;  %s371_s21 = smov [#allocation5]   ;;  %s18_s25 = sshll.u32 %s425_s0, 4  ;;  %s19_s25 = int_to_ptr.hbm [resolvable:$true] %s18_s25 }
   0x3   :  { %s31_s22 = sshll.u32 %s371_s21, 4  ;;  %s372_s26 = smov [#allocation2]   ;;  %s32_s22 = int_to_ptr.vmem [resolvable:$true] %s31_s22 }
   0x4   :  { %34 = dma.hbm_to_vmem [thread:$0]  %s30_s20, 64, %s32_s22, [#allocation6]  }
   0x5   :  { %s20_s27 = sshll.u32 %s372_s26, 4  ;;  %s41_s30 = sshll.u32 %s428_s3, 4  ;;  %s21_s27 = int_to_ptr.vmem [resolvable:$true] %s20_s27  ;;  %s42_s30 = int_to_ptr.hbm [resolvable:$true] %s41_s30 }
   0x6   :  { %23 = dma.hbm_to_vmem [thread:$0]  %s19_s25, 64, %s21_s27, [#allocation3]  }
   0x7   :  { %s373_s1 = smov [#allocation7]   ;;  %s374_s7 = smov 64  }
   0x8   :  { %s43_s6 = sshll.u32 %s373_s1, 4  ;;  %s375_s8 = smov 4   ;;  %s44_s6 = int_to_ptr.vmem [resolvable:$true] %s43_s6 }
   0x9   :  { %49 = dma.hbm_to_vmem [thread:$0]  %s42_s30, 1024, %s44_s6, [#allocation6], %s374_s7, %s374_s7, %s375_s8  }
   0xa   :  { %365 = dma.done.wait [#allocation3], 64  }
   0xb   :  { %366 = vsyncadd [#allocation3], 4294967232 }
   0xc   :  { %367 = dma.done.wait [#allocation6], 1088  }
   0xd   :  { %368 = vsyncadd [#allocation6], 4294966208  ;;  %vm75_vm0 = vcmask 1043456   ;;  %v66_v0 = vld [vmem:[#allocation5] sm:$0xf]  ;;  %vm71_vm1 = vcmask 64512  }
   0xe   :  { %v256_v1 = vld [vmem:[#allocation7 + $0x38] sm:$0xff]  ;;  %v77_v2 = vsel %vm75_vm0, %v66_v0, 0  ;;  %v255_v4 = vld [vmem:[#allocation7 + $0x30] sm:$0xff]  ;;  %v254_v5 = vld [vmem:[#allocation7 + $0x28] sm:$0xff]  ;;  %s205_s13 = sshll.u32 %s430_s5, 4  ;;  %s206_s13 = int_to_ptr.hbm [resolvable:$true] %s205_s13 }
   0xf   :  { %86 = vmatpush.bf16.msra.mxu0 %v77_v2  ;;  %v65_v3 = vld [vmem:[#allocation2] sm:$0xf]  ;;  %162 = vmatpush.bf16.msra.mxu1 %v256_v1  ;;  %v253_v6 = vld [vmem:[#allocation7 + $0x20] sm:$0xff]  ;;  %v251_v8 = vld [vmem:[#allocation7 + $0x10] sm:$0xff] }
  0x10   :  { %v252_v7 = vld [vmem:[#allocation7 + $0x18] sm:$0xff]  ;;  %v250_v9 = vld [vmem:[#allocation7 + $0x8] sm:$0xff]  ;;  %v249_v10 = vld [vmem:[#allocation7] sm:$0xff] }
  0x11   :  { %v263_v11 = vld [vmem:[%s427_s2] ss:$0 sm:$0xff]  ;;  %s376_s2 = smov [#allocation8]  }
  0x12   :  { %216 = vmatmul.msk.bf16.vlgmr.msra.gmra.mxu0 %vm71_vm1, %v65_v3  ;;  %v264_v17 = vld [vmem:[%s429_s4] ss:$0 sm:$0xff]  ;;  %s203_s4 = sshll.u32 %s376_s2, 4  ;;  %s204_s4 = int_to_ptr.vmem [resolvable:$true] %s203_s4 }
  0x13   :  { %163 = vmatpush.bf16.msra.mxu1 %v255_v4 }
  0x17   :  { %164 = vmatpush.bf16.msra.mxu1 %v254_v5 }
  0x1b   :  { %165 = vmatpush.bf16.msra.mxu1 %v253_v6 }
  0x1f   :  { %166 = vmatpush.bf16.msra.mxu1 %v252_v7 }
  0x23   :  { %167 = vmatpush.bf16.msra.mxu1 %v251_v8 }
  0x27   :  { %168 = vmatpush.bf16.msra.mxu1 %v250_v9 }
  0x2b   :  { %169 = vmatpush.bf16.msra.mxu1 %v249_v10 }
  0x8f   :  { %v88_v12 = vpop.f32.mrf.mxu0 }
  0x90   :  { %v89_v13 = vadd.f32 %v263_v11, %v88_v12 }
  0x92   :  { %v92_v14 = vmax.f32 %v89_v13, 0.0 }
  0x94   :  { %v93_v15 = vpack.c.bf16 %v92_v14, %v92_v14 }
  0x96   :  { %170 = vmatmul.bf16.vlgmr.msra.gmra.mxu1 %v93_v15 }
  0x97   :  { %v90_v16 = vpop.f32.mrf.mxu0 }
 0x113   :  { %v171_v18 = vpop.f32.mrf.mxu1 }
 0x114   :  { %v172_v19 = vadd.f32 %v264_v17, %v171_v18 }
 0x116   :  { %175 = vmax.xlane.f32.xlu0 %v172_v19 }
 0x11b   :  { %v173_v20 = vpop.f32.mrf.mxu1 }
 0x189   :  { %v176_v21 = vpop.xlane.xlu0 %175 }
 0x18a   :  { %v177_v22 = vsub.f32 %v172_v19, %v176_v21 }
 0x18c   :  { %v178_v23 = vmul.f32 1.442695, %v177_v22 }
 0x18e   :  { %265 = vpow2.f32 %v178_v23 }
 0x194   :  { %v266_v24 = vpop.eup %265 }
 0x195   :  { %180 = vadd.xlane.f32.xlu0 %v266_v24 }
 0x208   :  { %v181_v25 = vpop.xlane.xlu0 %180 }
 0x209   :  { %267 = vrcp.f32 %v181_v25  ;;  %v193_v29 = vand.u32 2147483648, %v181_v25  ;;  %v191_v31 = vand.u32 2147483647, %v181_v25  ;;  %vm187_vm3 = vweird.f32 %v181_v25 }
 0x20b   :  { %v194_v33 = vor.u32 1.1754944e-38, %v193_v29  ;;  %vm192_vm5 = vcmp.eq.f32.partialorder %v191_v31, 8.507059e+37 }
 0x20f   :  { %v268_v26 = vpop.eup %267 }
 0x210   :  { %v183_v27 = vmul.f32 %v268_v26, %v181_v25  ;;  %vm188_vm2 = vweird.f32 %v268_v26 }
 0x211   :  { %vm189_vm4 = vmor %vm187_vm3, %vm188_vm2 }
 0x212   :  { %v184_v28 = vsub.f32 1.0, %v183_v27 }
 0x214   :  { %v185_v30 = vmul.f32 %v268_v26, %v184_v28 }
 0x216   :  { %v186_v32 = vadd.f32 %v268_v26, %v185_v30 }
 0x218   :  { %v190_v34 = vsel %vm189_vm4, %v268_v26, %v186_v32 }
 0x219   :  { %v195_v35 = vsel %vm192_vm5, %v194_v33, %v190_v34 }
 0x21a   :  { %v196_v36 = vmul.f32 %v266_v24, %v195_v35 }
 0x21c   :  { %197 = vst [vmem:[#allocation8] sm:$0xff] %v196_v36 }
 0x21d   :  { %208 = dma.vmem_to_hbm [thread:$0]  %s204_s4, 128, %s206_s13, [#allocation4]  }
 0x21e   :  { %369 = dma.done.wait [#allocation4], 128  }
 0x21f   :  { %370 = vsyncadd [#allocation4], 4294967168 }
 0x220   :  { %213 = vsyncpa [#allocation3], 1 }
 0x221   :  { %214 = vsyncpa [#allocation6], 1 }
 0x222   :  { %215 = vsyncpa [#allocation4], 1 }

</bundles_post_ra>
